<compile_context>
chip_gen: v7x
topology: tpu7x:2x2x1
jax: 0.10.0
libtpu: 0.0.40
codegen_flags: <defaults>
</compile_context>

<pallas_src>
import functools

import jax
import jax.numpy as jnp
from jax.experimental import pallas as pl
from jax.experimental.pallas import tpu as pltpu

EPS = 1e-5
EXPANSION = 4


# ----------------------------------------------------------------------------
# helpers: tile selection / padding
# ----------------------------------------------------------------------------
def _round_up(x, m):
    return (x + m - 1) // m * m


def _row_tiles(m, max_tm):
    """Pick a row tile (multiple of 8) and padded row count."""
    if m >= max_tm:
        tm = max_tm
    else:
        tm = _round_up(max(m, 8), 8)
    return _round_up(m, tm), tm


def _k_tile(k):
    """K tile: full K when small, else a 128-multiple divisor."""
    if k <= 512:
        return k
    for t in (512, 256, 128):
        if k % t == 0:
            return t
    return k


# ----------------------------------------------------------------------------
# Pallas kernels
# ----------------------------------------------------------------------------
def _mm_bn_kernel(a_ref, b_ref, o_ref, sum_ref, sq_ref, acc_ref,
                  *, tm, n_rows, needs_mask):
    """bf16 matmul (K-tiled, f32 acc) + per-channel sum/sumsq epilogue."""
    k = pl.program_id(1)

    @pl.when(k == 0)
    def _init():
        acc_ref[...] = jnp.zeros_like(acc_ref)

    acc_ref[...] += jnp.dot(a_ref[...], b_ref[...],
                            preferred_element_type=jnp.float32)

    @pl.when(k == pl.num_programs(1) - 1)
    def _fin():
        y = acc_ref[...]
        if needs_mask:
            rows = (jax.lax.broadcasted_iota(jnp.int32, (tm, 1), 0)
                    + pl.program_id(0) * tm)
            y = jnp.where(rows < n_rows, y, 0.0)
        o_ref[...] = y
        sum_ref[0] = jnp.sum(y, axis=0, keepdims=True)
        sq_ref[0] = jnp.sum(y * y, axis=0, keepdims=True)


def _act_mm_bn_kernel(a_ref, scale_ref, shift_ref, b_ref,
                      o_ref, sum_ref, sq_ref, acc_ref,
                      *, tm, n_rows, needs_mask):
    """Prologue BN-affine + ReLU on f32 A, cast to bf16, then matmul+stats."""
    k = pl.program_id(1)

    @pl.when(k == 0)
    def _init():
        acc_ref[...] = jnp.zeros_like(acc_ref)

    a = jnp.maximum(a_ref[...] * scale_ref[...] + shift_ref[...], 0.0)
    acc_ref[...] += jnp.dot(a.astype(jnp.bfloat16), b_ref[...],
                            preferred_element_type=jnp.float32)

    @pl.when(k == pl.num_programs(1) - 1)
    def _fin():
        y = acc_ref[...]
        if needs_mask:
            rows = (jax.lax.broadcasted_iota(jnp.int32, (tm, 1), 0)
                    + pl.program_id(0) * tm)
            y = jnp.where(rows < n_rows, y, 0.0)
        o_ref[...] = y
        sum_ref[0] = jnp.sum(y, axis=0, keepdims=True)
        sq_ref[0] = jnp.sum(y * y, axis=0, keepdims=True)


def _bn_act_bf16_kernel(x_ref, scale_ref, shift_ref, o_ref):
    """BN affine + ReLU, bf16 output (feeds the next matmul / im2col)."""
    y = jnp.maximum(x_ref[...] * scale_ref[...] + shift_ref[...], 0.0)
    o_ref[...] = y.astype(o_ref.dtype)


def _bn_add_bn_relu_kernel(y_ref, sc_ref, s3_ref, b3_ref, ssc_ref, bsc_ref,
                           o_ref):
    """out = relu(bn3(y) + bn_sc(shortcut)) -- both affines fused."""
    y = y_ref[...] * s3_ref[...] + b3_ref[...]
    s = sc_ref[...].astype(jnp.float32) * ssc_ref[...] + bsc_ref[...]
    o_ref[...] = jnp.maximum(y + s, 0.0)


# ----------------------------------------------------------------------------
# Pallas wrappers
# ----------------------------------------------------------------------------
def fused_matmul(a, b, prologue=None):
    """(M, K) @ (K, N) with fused per-channel BN statistics.

    Returns (y_f32[M, N], sums[1, N], sumsqs[1, N]).
    If prologue=(scale, shift) (each (1, K), f32), applies
    relu(a*scale+shift) before casting A to bf16 (fuses the previous BN).
    """
    m, k = a.shape
    n = b.shape[1]
    b = b.astype(jnp.bfloat16)

    m_pad, tm = _row_tiles(m, 256)          # tm capped at 256 (v7x VMEM budget)
    tk = _k_tile(k)
    needs_mask = m_pad != m
    if needs_mask:
        a = jnp.pad(a, ((0, m_pad - m), (0, 0)))
    m_blocks = m_pad // tm
    k_blocks = k // tk

    out_shape = (
        jax.ShapeDtypeStruct((m_pad, n), jnp.float32),
        jax.ShapeDtypeStruct((m_blocks, 1, n), jnp.float32),
        jax.ShapeDtypeStruct((m_blocks, 1, n), jnp.float32),
    )
    out_specs = [
        pl.BlockSpec((tm, n), lambda i, kk: (i, 0)),
        pl.BlockSpec((1, 1, n), lambda i, kk: (i, 0, 0)),
        pl.BlockSpec((1, 1, n), lambda i, kk: (i, 0, 0)),
    ]
    scratch = [pltpu.VMEM((tm, n), jnp.float32)]

    if prologue is None:
        kernel = functools.partial(_mm_bn_kernel, tm=tm, n_rows=m,
                                   needs_mask=needs_mask)
        in_specs = [
            pl.BlockSpec((tm, tk), lambda i, kk: (i, kk)),
            pl.BlockSpec((tk, n), lambda i, kk: (kk, 0)),
        ]
        args = (a.astype(jnp.bfloat16), b)
    else:
        scale, shift = prologue
        kernel = functools.partial(_act_mm_bn_kernel, tm=tm, n_rows=m,
                                   needs_mask=needs_mask)
        in_specs = [
            pl.BlockSpec((tm, tk), lambda i, kk: (i, kk)),
            pl.BlockSpec((1, tk), lambda i, kk: (0, kk)),
            pl.BlockSpec((1, tk), lambda i, kk: (0, kk)),
            pl.BlockSpec((tk, n), lambda i, kk: (kk, 0)),
        ]
        args = (a, scale, shift, b)

    y, psum, psq = pl.pallas_call(
        kernel,
        out_shape=out_shape,
        grid_spec=pltpu.PrefetchScalarGridSpec(
            num_scalar_prefetch=0,
            grid=(m_blocks, k_blocks),
            in_specs=in_specs,
            out_specs=out_specs,
            scratch_shapes=scratch),
        compiler_params=pltpu.CompilerParams(
            dimension_semantics=("parallel", "arbitrary")),
    )(*args)

    if needs_mask:
        y = y[:m]
    sums = jnp.sum(psum, axis=0)   # (1, N)
    sqs = jnp.sum(psq, axis=0)     # (1, N)
    return y, sums, sqs


def pallas_bn_act_bf16(y, scale, shift):
    """relu(y*scale + shift) -> bf16, tiled over rows (bandwidth-bound)."""
    m, c = y.shape
    m_pad, tm = _row_tiles(m, 1024)
    if m_pad != m:
        y = jnp.pad(y, ((0, m_pad - m), (0, 0)))
    out = pl.pallas_call(
        _bn_act_bf16_kernel,
        out_shape=jax.ShapeDtypeStruct((m_pad, c), jnp.bfloat16),
        grid_spec=pltpu.PrefetchScalarGridSpec(
            num_scalar_prefetch=0,
            grid=(m_pad // tm,),
            in_specs=[pl.BlockSpec((tm, c), lambda i: (i, 0)),
                      pl.BlockSpec((1, c), lambda i: (0, 0)),
                      pl.BlockSpec((1, c), lambda i: (0, 0))],
            out_specs=pl.BlockSpec((tm, c), lambda i: (i, 0))),
        compiler_params=pltpu.CompilerParams(dimension_semantics=("parallel",)),
    )(y, scale, shift)
    return out[:m] if m_pad != m else out


def pallas_bn_add_bn_relu(y, sc, s3, b3, ssc, bsc):
    """relu(bn3(y) + bn_sc(sc)) in one pass."""
    m, c = y.shape
    m_pad, tm = _row_tiles(m, 1024)
    if m_pad != m:
        y = jnp.pad(y, ((0, m_pad - m), (0, 0)))
        sc = jnp.pad(sc, ((0, m_pad - m), (0, 0)))
    out = pl.pallas_call(
        _bn_add_bn_relu_kernel,
        out_shape=jax.ShapeDtypeStruct((m_pad, c), jnp.float32),
        grid_spec=pltpu.PrefetchScalarGridSpec(
            num_scalar_prefetch=0,
            grid=(m_pad // tm,),
            in_specs=[pl.BlockSpec((tm, c), lambda i: (i, 0)),
                      pl.BlockSpec((tm, c), lambda i: (i, 0)),
                      pl.BlockSpec((1, c), lambda i: (0, 0)),
                      pl.BlockSpec((1, c), lambda i: (0, 0)),
                      pl.BlockSpec((1, c), lambda i: (0, 0)),
                      pl.BlockSpec((1, c), lambda i: (0, 0))],
            out_specs=pl.BlockSpec((tm, c), lambda i: (i, 0))),
        compiler_params=pltpu.CompilerParams(dimension_semantics=("parallel",)),
    )(y, sc, s3, b3, ssc, bsc)
    return out[:m] if m_pad != m else out


# ----------------------------------------------------------------------------
# Glue: BN folding and im2col
# ----------------------------------------------------------------------------
def _bn_scale_shift(sums, sqs, count, gamma, beta):
    """Training-mode BN folded into per-channel scale/shift (f32 scalar glue)."""
    mean = sums / count
    var = jnp.maximum(sqs / count - mean * mean, 0.0)   # clamp vs cancellation
    scale = gamma[None, :] * jax.lax.rsqrt(var + EPS)
    shift = beta[None, :] - mean * scale
    return scale, shift


def im2col_3x3(x, stride):
    """im2col for 3x3 conv, pad=1, NHWC (channel order ky,kx,cin)."""
    n, h, w, c = x.shape
    ho = (h + 2 - 3) // stride + 1
    wo = (w + 2 - 3) // stride + 1
    xp = jnp.pad(x, ((0, 0), (1, 1), (1, 1), (0, 0)))
    cols = []
    for ky in range(3):
        for kx in range(3):
            cols.append(
                xp[:, ky:ky + stride * (ho - 1) + 1:stride,
                      kx:kx + stride * (wo - 1) + 1:stride, :])
    patches = jnp.concatenate(cols, axis=-1)
    return patches, ho, wo


# ----------------------------------------------------------------------------
# Bottleneck forward (expansion = 4, training-mode BN as in the PyTorch module)
# ----------------------------------------------------------------------------
def init_bottleneck_params(key, in_planes, planes, stride):
    out_planes = EXPANSION * planes
    ks = jax.random.split(key, 8)
    p = {
        "w1": 0.1 * jax.random.normal(ks[0], (in_planes, planes), jnp.float32),
        "w2": 0.1 * jax.random.normal(ks[1], (3, 3, planes, planes), jnp.float32),
        "w3": 0.1 * jax.random.normal(ks[2], (planes, out_planes), jnp.float32),
        "g1": 1.0 + 0.1 * jax.random.normal(ks[3], (planes,), jnp.float32),
        "b1": 0.1 * jax.random.normal(ks[4], (planes,), jnp.float32),
        "g2": 1.0 + 0.1 * jax.random.normal(ks[5], (planes,), jnp.float32),
        "b2": 0.1 * jax.random.normal(ks[6], (planes,), jnp.float32),
        "g3": jnp.ones((out_planes,), jnp.float32),
        "b3": jnp.zeros((out_planes,), jnp.float32),
    }
    if stride != 1 or in_planes != out_planes:
        kk = jax.random.split(ks[7], 3)
        p["w_sc"] = 0.1 * jax.random.normal(kk[0], (in_planes, out_planes), jnp.float32)
        p["g_sc"] = 1.0 + 0.1 * jax.random.normal(kk[1], (out_planes,), jnp.float32)
        p["b_sc"] = 0.1 * jax.random.normal(kk[2], (out_planes,), jnp.float32)
    return p


def bottleneck_forward(x_nchw, params, stride):
    x = jnp.transpose(x_nchw, (0, 2, 3, 1)).astype(jnp.float32)  # NCHW -> NHWC
    n, h, w, cin = x.shape
    planes = params["w1"].shape[1]
    out_planes = EXPANSION * planes

    # conv1 (1x1) + fused bn1 stats
    y1, s1, q1 = fused_matmul(x.reshape(-1, cin), params["w1"])
    sc1, sh1 = _bn_scale_shift(s1, q1, y1.shape[0], params["g1"], params["b1"])
    a1 = pallas_bn_act_bf16(y1, sc1, sh1).reshape(n, h, w, planes)

    # conv2 (3x3, stride, pad=1) via bf16 im2col + fused bn2 stats
    patches, ho, wo = im2col_3x3(a1, stride)
    y2, s2, q2 = fused_matmul(patches.reshape(-1, 9 * planes),
                              params["w2"].reshape(9 * planes, planes))
    sc2, sh2 = _bn_scale_shift(s2, q2, y2.shape[0], params["g2"], params["b2"])

    # conv3 (1x1) with bn2 affine+ReLU fused into the prologue + fused bn3 stats
    y3, s3, q3 = fused_matmul(y2, params["w3"], prologue=(sc2, sh2))
    sc3, sh3 = _bn_scale_shift(s3, q3, y3.shape[0], params["g3"], params["b3"])

    # shortcut
    if "w_sc" in params:
        xs = x[:, ::stride, ::stride, :].reshape(-1, cin)
        ysc, ss, qs = fused_matmul(xs, params["w_sc"])
        scsc, shsc = _bn_scale_shift(ss, qs, ysc.shape[0],
                                     params["g_sc"], params["b_sc"])
    else:
        ysc = x[:, ::stride, ::stride, :].reshape(-1, cin)
        scsc = jnp.ones((1, out_planes), jnp.float32)
        shsc = jnp.zeros((1, out_planes), jnp.float32)

    out = pallas_bn_add_bn_relu(y3, ysc, sc3, sh3, scsc, shsc)
    out = out.reshape(n, ho, wo, out_planes)
    return jnp.transpose(out, (0, 3, 1, 2))  # NHWC -> NCHW


# ----------------------------------------------------------------------------
# Pure-JAX reference (mirrors bf16-operand / f32-accumulate precision)
# ----------------------------------------------------------------------------
def _ref_mm(a, b):
    return jnp.dot(a.astype(jnp.bfloat16), b.astype(jnp.bfloat16),
                   preferred_element_type=jnp.float32)


def _ref_scale_shift(y, g, b):
    mean = y.mean(0, keepdims=True)
    var = jnp.maximum((y * y).mean(0, keepdims=True) - mean * mean, 0.0)
    scale = g[None, :] * jax.lax.rsqrt(var + EPS)
    shift = b[None, :] - mean * scale
    return scale, shift


def bottleneck_ref(x_nchw, params, stride):
    x = jnp.transpose(x_nchw, (0, 2, 3, 1)).astype(jnp.float32)
    n, h, w, cin = x.shape
    planes = params["w1"].shape[1]
    out_planes = EXPANSION * planes

    y1 = _ref_mm(x.reshape(-1, cin), params["w1"])
    s1, b1 = _ref_scale_shift(y1, params["g1"], params["b1"])
    a1 = jax.nn.relu(y1 * s1 + b1).astype(jnp.bfloat16).reshape(n, h, w, planes)

    patches, ho, wo = im2col_3x3(a1, stride)
    y2 = _ref_mm(patches.reshape(-1, 9 * planes),
                 params["w2"].reshape(9 * planes, planes))
    s2, b2 = _ref_scale_shift(y2, params["g2"], params["b2"])
    a2 = jax.nn.relu(y2 * s2 + b2)

    y3 = _ref_mm(a2, params["w3"])
    s3, b3 = _ref_scale_shift(y3, params["g3"], params["b3"])

    if "w_sc" in params:
        xs = x[:, ::stride, ::stride, :].reshape(-1, cin)
        ysc = _ref_mm(xs, params["w_sc"])
        ssc, bsc = _ref_scale_shift(ysc, params["g_sc"], params["b_sc"])
        sc = ysc * ssc + bsc
    else:
        sc = x[:, ::stride, ::stride, :].reshape(-1, cin)

    out = jax.nn.relu(y3 * s3 + b3 + sc).reshape(n, ho, wo, out_planes)
    return jnp.transpose(out, (0, 3, 1, 2))


# ----------------------------------------------------------------------------
if __name__ == "__main__":
    key = jax.random.PRNGKey(0)
    cases = [
        (4, 4, 1),    # projection shortcut, stride 1
        (16, 4, 1),   # identity shortcut
        (8, 4, 2),    # projection shortcut, stride 2
    ]
    for idx, (in_planes, planes, stride) in enumerate(cases):
        kx, kp, key = jax.random.split(key, 3)
        x = jax.random.normal(kx, (2, in_planes, 16, 16), jnp.float32)  # NCHW
        params = init_bottleneck_params(kp, in_planes, planes, stride)

        out = jax.block_until_ready(bottleneck_forward(x, params, stride))
        ref = jax.block_until_ready(bottleneck_ref(x, params, stride))

        ho = (16 + 2 - 3) // stride + 1
        assert out.shape == (2, EXPANSION * planes, ho, ho), out.shape
        assert jnp.allclose(out, ref, rtol=1e-2, atol=1e-2), f"mismatch in case {idx}"

    print("KERNEL_OK")
</pallas_src>

<mosaic_0001>
module attributes {stable_mosaic.version = 11 : i64} {
  func.func @_mm_bn_kernel(%arg0: i32, %arg1: i32, %arg2: memref<256x4xbf16, #tpu.memory_space<vmem>>, %arg3: memref<4x4xbf16, #tpu.memory_space<vmem>>, %arg4: memref<256x4xf32, #tpu.memory_space<vmem>>, %arg5: memref<1x1x4xf32, #tpu.memory_space<vmem>>, %arg6: memref<1x1x4xf32, #tpu.memory_space<vmem>>, %arg7: memref<256x4xf32, #tpu.memory_space<vmem>>) attributes {dimension_semantics = [#tpu.dimension_semantics<parallel>, #tpu.dimension_semantics<arbitrary>], iteration_bounds = array<i64: 2, 1>, scalar_prefetch = 0 : i64, scratch_operands = 1 : i64, tpu.core_type = #tpu.core_type<tc>, window_params = [{transform_indices = @transform_0, window_bounds = array<i64: 256, 4>}, {transform_indices = @transform_1, window_bounds = array<i64: 4, 4>}, {transform_indices = @transform_2, window_bounds = array<i64: 256, 4>}, {transform_indices = @transform_3, window_bounds = array<i64: 1, 1, 4>}, {transform_indices = @transform_4, window_bounds = array<i64: 1, 1, 4>}]} {
    %c0_i32 = arith.constant 0 : i32
    %0 = arith.cmpi eq, %arg1, %c0_i32 : i32
    %1 = arith.extui %0 : i1 to i32
    %c0_i32_0 = arith.constant 0 : i32
    %2 = arith.cmpi ne, %1, %c0_i32_0 : i32
    scf.if %2 {
      %cst_10 = arith.constant 0.000000e+00 : f32
      %12 = vector.broadcast %cst_10 : f32 to vector<256x4xf32>
      %c0_11 = arith.constant 0 : index
      %c0_12 = arith.constant 0 : index
      %13 = vector.load %arg7[%c0_11, %c0_12] : memref<256x4xf32, #tpu.memory_space<vmem>>, vector<256x4xf32>
      tpu.vector_store %arg7[%c0_11, %c0_12], %12 {strides = array<i32>} : memref<256x4xf32, #tpu.memory_space<vmem>>, vector<256x4xf32>,
    } else {
    }
    %c0 = arith.constant 0 : index
    %c0_1 = arith.constant 0 : index
    %3 = vector.load %arg7[%c0, %c0_1] : memref<256x4xf32, #tpu.memory_space<vmem>>, vector<256x4xf32>
    %c0_2 = arith.constant 0 : index
    %c0_3 = arith.constant 0 : index
    %4 = vector.load %arg2[%c0_2, %c0_3] : memref<256x4xbf16, #tpu.memory_space<vmem>>, vector<256x4xbf16>
    %c0_4 = arith.constant 0 : index
    %c0_5 = arith.constant 0 : index
    %5 = vector.load %arg3[%c0_4, %c0_5] : memref<4x4xbf16, #tpu.memory_space<vmem>>, vector<4x4xbf16>
    %cst = arith.constant dense<0.000000e+00> : vector<256x4xf32>
    %6 = tpu.matmul %4, %5, %cst {dimension_numbers = #tpu.dot_dimension_numbers<[1], [0], [0], [1], [0, 0, 1, 1], [], []>} : vector<256x4xbf16>, vector<4x4xbf16>, vector<256x4xf32> -> vector<256x4xf32>
    %7 = arith.addf %3, %6 : vector<256x4xf32>
    %c0_6 = arith.constant 0 : index
    %c0_7 = arith.constant 0 : index
    %8 = vector.load %arg7[%c0_6, %c0_7] : memref<256x4xf32, #tpu.memory_space<vmem>>, vector<256x4xf32>
    tpu.vector_store %arg7[%c0_6, %c0_7], %7 {strides = array<i32>} : memref<256x4xf32, #tpu.memory_space<vmem>>, vector<256x4xf32>,
    %c0_i32_8 = arith.constant 0 : i32
    %9 = arith.cmpi eq, %arg1, %c0_i32_8 : i32
    %10 = arith.extui %9 : i1 to i32
    %c0_i32_9 = arith.constant 0 : i32
    %11 = arith.cmpi ne, %10, %c0_i32_9 : i32
    scf.if %11 {
      %c0_10 = arith.constant 0 : index
      %c0_11 = arith.constant 0 : index
      %12 = vector.load %arg7[%c0_10, %c0_11] : memref<256x4xf32, #tpu.memory_space<vmem>>, vector<256x4xf32>
      %c0_12 = arith.constant 0 : index
      %c0_13 = arith.constant 0 : index
      %13 = vector.load %arg4[%c0_12, %c0_13] : memref<256x4xf32, #tpu.memory_space<vmem>>, vector<256x4xf32>
      tpu.vector_store %arg4[%c0_12, %c0_13], %12 {strides = array<i32>} : memref<256x4xf32, #tpu.memory_space<vmem>>, vector<256x4xf32>,
      %cst_14 = arith.constant dense<0.000000e+00> : vector<4xf32>
      %14 = vector.multi_reduction <add>, %12, %cst_14 [0] : vector<256x4xf32> to vector<4xf32>
      %15 = vector.shape_cast %14 : vector<4xf32> to vector<1x4xf32>
      %c0_15 = arith.constant 0 : index
      %c0_16 = arith.constant 0 : index
      %c0_17 = arith.constant 0 : index
      %16 = vector.load %arg5[%c0_15, %c0_16, %c0_17] : memref<1x1x4xf32, #tpu.memory_space<vmem>>, vector<1x1x4xf32>
      %17 = vector.shape_cast %16 : vector<1x1x4xf32> to vector<1x4xf32>
      %18 = vector.shape_cast %15 : vector<1x4xf32> to vector<1x1x4xf32>
      tpu.vector_store %arg5[%c0_15, %c0_16, %c0_17], %18 {strides = array<i32>} : memref<1x1x4xf32, #tpu.memory_space<vmem>>, vector<1x1x4xf32>,
      %19 = arith.mulf %12, %12 : vector<256x4xf32>
      %cst_18 = arith.constant dense<0.000000e+00> : vector<4xf32>
      %20 = vector.multi_reduction <add>, %19, %cst_18 [0] : vector<256x4xf32> to vector<4xf32>
      %21 = vector.shape_cast %20 : vector<4xf32> to vector<1x4xf32>
      %c0_19 = arith.constant 0 : index
      %c0_20 = arith.constant 0 : index
      %c0_21 = arith.constant 0 : index
      %22 = vector.load %arg6[%c0_19, %c0_20, %c0_21] : memref<1x1x4xf32, #tpu.memory_space<vmem>>, vector<1x1x4xf32>
      %23 = vector.shape_cast %22 : vector<1x1x4xf32> to vector<1x4xf32>
      %24 = vector.shape_cast %21 : vector<1x4xf32> to vector<1x1x4xf32>
      tpu.vector_store %arg6[%c0_19, %c0_20, %c0_21], %24 {strides = array<i32>} : memref<1x1x4xf32, #tpu.memory_space<vmem>>, vector<1x1x4xf32>,
    } else {
    }
    return
  }
  func.func @transform_0(%arg0: i32, %arg1: i32) -> (i32, i32) {
    %c0_i32 = arith.constant 0 : i32
    return %arg0, %arg1 : i32, i32
  }
  func.func @transform_1(%arg0: i32, %arg1: i32) -> (i32, i32) {
    %c0_i32 = arith.constant 0 : i32
    %c0_i32_0 = arith.constant 0 : i32
    return %arg1, %c0_i32 : i32, i32
  }
  func.func @transform_2(%arg0: i32, %arg1: i32) -> (i32, i32) {
    %c0_i32 = arith.constant 0 : i32
    %c0_i32_0 = arith.constant 0 : i32
    return %arg0, %c0_i32 : i32, i32
  }
  func.func @transform_3(%arg0: i32, %arg1: i32) -> (i32, i32, i32) {
    %c0_i32 = arith.constant 0 : i32
    %c0_i32_0 = arith.constant 0 : i32
    %c0_i32_1 = arith.constant 0 : i32
    return %arg0, %c0_i32, %c0_i32_0 : i32, i32, i32
  }
  func.func @transform_4(%arg0: i32, %arg1: i32) -> (i32, i32, i32) {
    %c0_i32 = arith.constant 0 : i32
    %c0_i32_0 = arith.constant 0 : i32
    %c0_i32_1 = arith.constant 0 : i32
    return %arg0, %c0_i32, %c0_i32_0 : i32, i32, i32
  }
}

</mosaic_0001>

<bundles_post_ra>
// kernel: tpu_custom_call.1
= control target key start
LH: loop header
LB: loop body
LE: loop exit
PB: predicated region body
PF: predicated region fallthrough
CT: control target
= control target key end

     0   :  { %10 = vsyncpa [#allocation4], 0  ;;  %s1941_s0 = inlined_call_operand.vmem [shape: bf16[512,4], index: 0, kind: input, shape index: {}]   ;;  %s1942_s1 = inlined_call_operand.vmem [shape: bf16[4,4], index: 1, kind: input, shape index: {}]   ;;  %s1943_s2 = inlined_call_operand.vmem [shape: f32[512,4], index: 2, kind: output, shape index: {0}]   ;;  %s1944_s3 = inlined_call_operand.hbm [shape: f32[2,1,4], index: 3, kind: output, shape index: {1}]   ;;  %s1945_s4 = inlined_call_operand.hbm [shape: f32[2,1,4], index: 4, kind: output, shape index: {2}]  }
   0x1   :  { %12 = vsyncpa [#allocation4 + $0x1], 0 }
   0x2   :  { %13 = vsyncpa [#allocation6], 0 }
   0x3   :  { %15 = vsyncpa [#allocation6 + $0x1], 0  ;;  %s1452_s15 = smov 0   ;;  %s1454_s16 = smov 0  }
   0x4   :  { %s1456_s17 = smov 0   ;;  %s1458_s18 = smov 0  }
   0x5   :  { %s1460_s19 = smov 0   ;;  %s1462_s20 = smov 0  }
   0x6 LB: > { %s1134_s21 = sadd.s32 4294967295, %s1422_s20   ;;  %s1135_s22 = sadd.s32 4294967294, %s1422_s20   ;;  %s1422_s20 = sphi %s1462_s20, %s21_s20   ;;  %s1418_s19 = sphi %s1460_s19, %s1953_s19   ;;  %s1414_s18 = sphi %s1458_s18, %s1952_s18   ;;  %s1410_s17 = sphi %s1456_s17, %s1951_s17   ;;  %s1406_s16 = sphi %s1454_s16, %s1950_s16   ;;  %s1402_s15 = sphi %s1452_s15, %s1949_s15  }
   0x7   : > { %s33_s23 = sadd.s32 1, %s1418_s19  ;;  %s120_s24 = sadd.s32 1, %s1410_s17 }
   0x8   : > { %p35_p0 = scmp.ge.s32.totalorder %s33_s23, 2  ;;  %p130_p1 = scmp.ne.s32.totalorder %s1410_s17, %s1406_s16 }
   0x9   : > { %p131_p2 = scmp.eq.s32.totalorder %s1134_s21, 1  ;;  %p136_p3 = scmp.ne.s32.totalorder %s1406_s16, %s1402_s15 }
   0xa   : > { %s1955_s23 = smov (%p35_p0, %s33_s23), 0  ;;  %p137_p5 = scmp.eq.s32.totalorder %s1135_s22, 1 }
   0xb   : > { %p1492_p4 = por %p131_p2, %p130_p1  ;;  %s117_s26 = ssub.s32 %s1418_s19, %s1955_s23 }
   0xc   : > { %p1139_p6 = scmp.ge.s32.totalorder %s1422_s20, 1  ;;  %p118_p7 = scmp.eq.s32.totalorder %s117_s26, 0 }
   0xd   : > { %p1499_p8 = por %p137_p5, %p136_p3  ;;  %p200_p9 = scmp.lt.s32.totalorder %s1422_s20, 3 }
   0xe   : > { %s1505_s28 = scalar_select %p118_p7, %s1410_s17, %s120_s24  }
   0xf   : > { %p201_p10 = pnand %p1139_p6, %p200_p9 }
  0x10   : > { %v362_v0 = vld [vmem:[%s1942_s1] sm:$0x3] (!%p201_p10)  ;;  %vm492_vm0 = vcmask (!%p201_p10), 1041408   ;;  %s1140_s5 = sshll.u32 (!%p201_p10), %s1414_s18, 5  ;;  %vm265_vm1 = vcmask (!%p201_p10), 31744   ;;  %v1424_v2 = vmov (!%p201_p10), 0.0  }
  0x11   : > { %204 = sbr.rel (%p201_p10) target bundleno = 366 (0x16e), region = 28  ;;  %1233 = vmatprep.subr.msk.bf16.mxu0 (!%p201_p10), %vm492_vm0, %v362_v0  ;;  %v494_v1 = vsel (!%p201_p10), %vm492_vm0, %v362_v0, 0  ;;  %p1513_p11 = scmp.lt.s32.totalorder (!%p201_p10), %s1140_s5, 63  ;;  %1234 = vmatprep.subr.msk.bf16.mxu1 (!%p201_p10), %vm492_vm0, %v362_v0  ;;  %268 = vst.msk [vmem:[#allocation2 + $0x10] sm:$0xff] (!%p201_p10), %vm265_vm1, %v1424_v2  ;;  %266 = vst.msk [vmem:[#allocation2] sm:$0xff] (!%p201_p10), %vm265_vm1, %v1424_v2  ;;  %vm857_vm2 = vcmask (!%p201_p10), 24576  }
  0x12   : > { %267 = vst.msk [vmem:[#allocation2 + $0x8] sm:$0xff] (!%p201_p10), %vm265_vm1, %v1424_v2  ;;  %269 = vst.msk [vmem:[#allocation2 + $0x18] sm:$0xff] (!%p201_p10), %vm265_vm1, %v1424_v2  ;;  %1198 = vmatpush3.bf16.msra.mxu0 (!%p201_p10), %v494_v1  ;;  %1232 = vmatpush3.bf16.msra.mxu1 (!%p201_p10), %v494_v1  ;;  %s1850_s21 = sand.u32 (!%p201_p10), 1, %s1406_s16   ;;  %s1176_s22 = sshll.u32 (!%p201_p10), %s1414_s18, 4 }
  0x13   : > { %270 = vst.msk [vmem:[#allocation2 + $0x20] sm:$0xff] (!%p201_p10), %vm265_vm1, %v1424_v2  ;;  %271 = vst.msk [vmem:[#allocation2 + $0x28] sm:$0xff] (!%p201_p10), %vm265_vm1, %v1424_v2  ;;  %s234_s24 = scalar_lea.vmem (!%p201_p10), [#allocation3], %s1850_s21  ;;  %s240_s29 = scalar_lea.vmem (!%p201_p10), [#allocation5], %s1850_s21 }
  0x14   : > { %272 = vst.msk [vmem:[#allocation2 + $0x30] sm:$0xff] (!%p201_p10), %vm265_vm1, %v1424_v2  ;;  %273 = vst.msk [vmem:[#allocation2 + $0x38] sm:$0xff] (!%p201_p10), %vm265_vm1, %v1424_v2  ;;  %s987_s26 = sshll.u32 (!%p201_p10), %s234_s24, 4  ;;  %s1000_s30 = sshll.u32 (!%p201_p10), %s240_s29, 4  ;;  %s1862_s26 = int_to_ptr.vmem [resolvable:$true] %s987_s26  ;;  %s1870_s30 = int_to_ptr.vmem [resolvable:$true] %s1000_s30 }
  0x15   : > { %274 = vst.msk [vmem:[#allocation2 + $0x40] sm:$0xff] (!%p201_p10), %vm265_vm1, %v1424_v2  ;;  %275 = vst.msk [vmem:[#allocation2 + $0x48] sm:$0xff] (!%p201_p10), %vm265_vm1, %v1424_v2  ;;  %s1868_s9 = scalar_lea.hbm (!%p201_p10), %s1945_s4, %s1176_s22  ;;  %s1425_s12 = smov (!%p201_p10), [#allocation3]  }
  0x16   : > { %276 = vst.msk [vmem:[#allocation2 + $0x50] sm:$0xff] (!%p201_p10), %vm265_vm1, %v1424_v2  ;;  %277 = vst.msk [vmem:[#allocation2 + $0x58] sm:$0xff] (!%p201_p10), %vm265_vm1, %v1424_v2  ;;  %s1316_s13 = sshll.u32 (!%p201_p10), %s1425_s12, 4  ;;  %s1317_s13 = int_to_ptr.vmem [resolvable:$false] %s1316_s13 }
  0x17   : > { %278 = vst.msk [vmem:[#allocation2 + $0x60] sm:$0xff] (!%p201_p10), %vm265_vm1, %v1424_v2  ;;  %279 = vst.msk [vmem:[#allocation2 + $0x68] sm:$0xff] (!%p201_p10), %vm265_vm1, %v1424_v2  ;;  %p1319_p1 = scmp.lt.s32.totalorder (!%p201_p10), %s1862_s26, %s1317_s13 }
  0x18   : > { %280 = vst.msk [vmem:[#allocation2 + $0x70] sm:$0xff] %vm265_vm1, %v1424_v2  ;;  %281 = vst.msk [vmem:[#allocation2 + $0x78] sm:$0xff] %vm265_vm1, %v1424_v2  ;;  %s1957_s5 = smov (!%p1513_p11, %s1140_s5), 63  ;;  %v300_v19 = vld [vmem:[#allocation2 + $0x10] sm:$0xff]  ;;  %v298_v20 = vld [vmem:[#allocation2] sm:$0xff] }
  0x19   : > { %282 = vst.msk [vmem:[#allocation2 + $0x80] sm:$0xff] %vm265_vm1, %v1424_v2  ;;  %283 = vst.msk [vmem:[#allocation2 + $0x88] sm:$0xff] %vm265_vm1, %v1424_v2  ;;  %s1141_s7 = sshll.u32 %s1957_s5, 2  ;;  %v301_v22 = vld [vmem:[#allocation2 + $0x18] sm:$0xff]  ;;  %v299_v25 = vld [vmem:[#allocation2 + $0x8] sm:$0xff]  ;;  %s1143_s11 = sshll.u32 %s1957_s5, 3 }
  0x1a   : > { %284 = vst.msk [vmem:[#allocation2 + $0x90] sm:$0xff] %vm265_vm1, %v1424_v2  ;;  %285 = vst.msk [vmem:[#allocation2 + $0x98] sm:$0xff] %vm265_vm1, %v1424_v2  ;;  %s1559_s10 = scalar_lea.vmem %s1941_s0, %s1141_s7  ;;  %v302_v33 = vld [vmem:[#allocation2 + $0x20] sm:$0xff]  ;;  %s1601_s14 = scalar_lea.vmem %s1943_s2, %s1143_s11  ;;  %v303_v41 = vld [vmem:[#allocation2 + $0x28] sm:$0xff] }
  0x1b   : > { %286 = vst.msk [vmem:[#allocation2 + $0xa0] sm:$0xff] %vm265_vm1, %v1424_v2  ;;  %287 = vst.msk [vmem:[#allocation2 + $0xa8] sm:$0xff] %vm265_vm1, %v1424_v2  ;;  %v1296_v3 = vld [vmem:[%s1559_s10] sm:$0xff]   ;;  %v1297_v4 = vld [vmem:[%s1559_s10 + $0x8] sm:$0xff]   ;;  %s1860_s7 = scalar_lea.hbm %s1944_s3, %s1176_s22  ;;  %s1312_s11 = scalar_lea.vmem %s1862_s26, 16 }
  0x1c   : > { %288 = vst.msk [vmem:[#allocation2 + $0xb0] sm:$0xff] %vm265_vm1, %v1424_v2  ;;  %289 = vst.msk [vmem:[#allocation2 + $0xb8] sm:$0xff] %vm265_vm1, %v1424_v2  ;;  %1199 = vmatprep.mubr.msk.bf16.mxu0 %vm265_vm1, %v1296_v3  ;;  %v1298_v5 = vld [vmem:[%s1559_s10 + $0x10] sm:$0xff]   ;;  %v1299_v6 = vld [vmem:[%s1559_s10 + $0x18] sm:$0xff]   ;;  %p1313_p12 = scmp.ne.s32.totalorder %s1862_s26, %s1312_s11 }
  0x1d   : > { %290 = vst.msk [vmem:[#allocation2 + $0xc0] sm:$0xff] %vm265_vm1, %v1424_v2  ;;  %291 = vst.msk [vmem:[#allocation2 + $0xc8] sm:$0xff] %vm265_vm1, %v1424_v2  ;;  %1200 = vmatmul.mubr.msk.bf16.vlgmr.msra.gmra.mrb[0].mxu0 %vm265_vm1, %v1297_v4  ;;  %v1300_v7 = vld [vmem:[%s1559_s10 + $0x20] sm:$0xff]   ;;  %v1305_v9 = vld [vmem:[%s1559_s10 + $0x48] sm:$0xff]  }
  0x1e   : > { %292 = vst.msk [vmem:[#allocation2 + $0xd0] sm:$0xff] %vm265_vm1, %v1424_v2  ;;  %293 = vst.msk [vmem:[#allocation2 + $0xd8] sm:$0xff] %vm265_vm1, %v1424_v2  ;;  %1203 = vmatprep.mubr.msk.bf16.mxu0 %vm265_vm1, %v1298_v5  ;;  %v1304_v8 = vld [vmem:[%s1559_s10 + $0x40] sm:$0xff]   ;;  %v1306_v10 = vld [vmem:[%s1559_s10 + $0x50] sm:$0xff]   ;;  %p1314_p13 = pnand %p1313_p12, %p1492_p4 }
  0x1f   : > { %294 = vst.msk [vmem:[#allocation2 + $0xe0] sm:$0xff] %vm265_vm1, %v1424_v2  ;;  %295 = vst.msk [vmem:[#allocation2 + $0xe8] sm:$0xff] %vm265_vm1, %v1424_v2  ;;  %1215 = vmatprep.mubr.msk.bf16.mxu1 %vm265_vm1, %v1304_v8  ;;  %v1301_v11 = vld [vmem:[%s1559_s10 + $0x28] sm:$0xff]   ;;  %v1307_v12 = vld [vmem:[%s1559_s10 + $0x58] sm:$0xff]  }
  0x20   : > { %296 = vst.msk [vmem:[#allocation2 + $0xf0] sm:$0xff] %vm265_vm1, %v1424_v2  ;;  %297 = vst.msk [vmem:[#allocation2 + $0xf8] sm:$0xff] %vm265_vm1, %v1424_v2  ;;  %1216 = vmatmul.mubr.msk.bf16.vlgmr.msra.gmra.mrb[0].mxu1 %vm265_vm1, %v1305_v9  ;;  %v1302_v13 = vld [vmem:[%s1559_s10 + $0x30] sm:$0xff]   ;;  %v1308_v14 = vld [vmem:[%s1559_s10 + $0x60] sm:$0xff]   ;;  %p1315_p0 = pneg %p1314_p13 }
  0x21   : > { %1219 = vmatprep.mubr.msk.bf16.mxu1 %vm265_vm1, %v1306_v10  ;;  %v1303_v15 = vld [vmem:[%s1559_s10 + $0x38] sm:$0xff]   ;;  %v1309_v16 = vld [vmem:[%s1559_s10 + $0x68] sm:$0xff]   ;;  %v1310_v17 = vld [vmem:[%s1559_s10 + $0x70] sm:$0xff]  }
  0x22   : > { %v1311_v18 = vld [vmem:[%s1559_s10 + $0x78] sm:$0xff]   ;;  %v304_v31 = vld [vmem:[#allocation2 + $0x30] sm:$0xff]  ;;  %v314_v34 = vld [vmem:[#allocation2 + $0x80] sm:$0xff]  ;;  %s967_s10 = scalar_lea.sflag [#allocation4], %s1850_s21 }
  0x23   : > { %v316_v32 = vld [vmem:[#allocation2 + $0x90] sm:$0xff]  ;;  %v305_v36 = vld [vmem:[#allocation2 + $0x38] sm:$0xff]  ;;  %v315_v44 = vld [vmem:[#allocation2 + $0x88] sm:$0xff] }
  0x24   : > { %v317_v38 = vld [vmem:[#allocation2 + $0x98] sm:$0xff]  ;;  %v308_v0 = vld [vmem:[#allocation2 + $0x50] sm:$0xff]  ;;  %v306_v4 = vld [vmem:[#allocation2 + $0x40] sm:$0xff] }
  0x25   : > { %1204 = vmatmul.mubr.msk.bf16.gmra.mrb[4].mxu0 %vm265_vm1, %v1299_v6  ;;  %v320_v1 = vld [vmem:[#allocation2 + $0xb0] sm:$0xff]  ;;  %v318_v5 = vld [vmem:[#allocation2 + $0xa0] sm:$0xff] }
  0x26   : > { %1207 = vmatprep.mubr.msk.bf16.mxu0 %vm265_vm1, %v1300_v7 }
  0x28   : > { %1220 = vmatmul.mubr.msk.bf16.gmra.mrb[4].mxu1 %vm265_vm1, %v1307_v12 }
  0x29   : > { %1223 = vmatprep.mubr.msk.bf16.mxu1 %vm265_vm1, %v1308_v14 }
  0x2d   : > { %1208 = vmatmul.mubr.msk.bf16.gmra.mrb[8].mxu0 %vm265_vm1, %v1301_v11 }
  0x2e   : > { %1211 = vmatprep.mubr.msk.bf16.mxu0 %vm265_vm1, %v1302_v13 }
  0x30   : > { %1224 = vmatmul.mubr.msk.bf16.gmra.mrb[8].mxu1 %vm265_vm1, %v1309_v16  ;;  %v307_v16 = vld [vmem:[#allocation2 + $0x48] sm:$0xff] }
  0x31   : > { %1227 = vmatprep.mubr.msk.bf16.mxu1 %vm265_vm1, %v1310_v17 }
  0x35   : > { %1212 = vmatmul.mubr.msk.bf16.gmra.mrb[12].mxu0 %vm265_vm1, %v1303_v15  ;;  %v309_v15 = vld [vmem:[#allocation2 + $0x58] sm:$0xff] }
  0x38   : > { %1228 = vmatmul.mubr.msk.bf16.gmra.mrb[12].mxu1 %vm265_vm1, %v1311_v18 }
  0xf0   : > { %v1201_v21 = vpop.f32.mrb[0].mxu0 }
  0xf1   : > { %v659_v23 = vadd.f32 %v1201_v21, %v300_v19  ;;  %v530_v24 = vpop.f32.mrb[1].mxu0 }
  0xf2   : > { %v657_v26 = vadd.f32 %v530_v24, %v298_v20  ;;  %v1202_v27 = vpop.f32.mrb[2].mxu0 }
  0xf3   : > { %691 = vst.msk [vmem:[#allocation2 + $0x10] sm:$0xff] %vm265_vm1, %v659_v23  ;;  %v660_v28 = vadd.f32 %v1202_v27, %v301_v22  ;;  %v533_v29 = vpop.f32.mrb[3].mxu0  ;;  %v1217_v37 = vpop.f32.mrb[0].mxu1 }
  0xf4   : > { %689 = vst.msk [vmem:[#allocation2] sm:$0xff] %vm265_vm1, %v657_v26  ;;  %v658_v30 = vadd.f32 %v533_v29, %v299_v25  ;;  %v675_v42 = vadd.f32 %v1217_v37, %v316_v32  ;;  %v594_v43 = vpop.f32.mrb[1].mxu1 }
  0xf5   : > { %692 = vst.msk [vmem:[#allocation2 + $0x18] sm:$0xff] %vm265_vm1, %v660_v28  ;;  %v673_v48 = vadd.f32 %v594_v43, %v314_v34  ;;  %v1218_v49 = vpop.f32.mrb[2].mxu1 }
  0xf6   : > { %690 = vst.msk [vmem:[#allocation2 + $0x8] sm:$0xff] %vm265_vm1, %v658_v30  ;;  %707 = vst.msk [vmem:[#allocation2 + $0x90] sm:$0xff] %vm265_vm1, %v675_v42  ;;  %v676_v53 = vadd.f32 %v1218_v49, %v317_v38  ;;  %v597_v54 = vpop.f32.mrb[3].mxu1 }
  0xf7   : > { %705 = vst.msk [vmem:[#allocation2 + $0x80] sm:$0xff] %vm265_vm1, %v673_v48  ;;  %v674_v58 = vadd.f32 %v597_v54, %v315_v44  ;;  %v312_v48 = vld [vmem:[#allocation2 + $0x70] sm:$0xff] }
  0xf8   : > { %v1205_v35 = vpop.f32.mrb[4].mxu0  ;;  %708 = vst.msk [vmem:[#allocation2 + $0x98] sm:$0xff] %vm265_vm1, %v676_v53 }
  0xf9   : > { %v663_v39 = vadd.f32 %v1205_v35, %v304_v31  ;;  %v546_v40 = vpop.f32.mrb[5].mxu0  ;;  %706 = vst.msk [vmem:[#allocation2 + $0x88] sm:$0xff] %vm265_vm1, %v674_v58 }
  0xfa   : > { %v726_v45 = vld [vmem:[#allocation2 + $0x10] sm:$0xff]  ;;  %v661_v46 = vadd.f32 %v546_v40, %v302_v33  ;;  %v1206_v47 = vpop.f32.mrb[6].mxu0 }
  0xfb   : > { %758 = vst.msk [vmem:[%s1601_s14 + $0x10] sm:$0xff] %vm265_vm1, %v726_v45  ;;  %v724_v50 = vld [vmem:[#allocation2] sm:$0xff]  ;;  %695 = vst.msk [vmem:[#allocation2 + $0x30] sm:$0xff] %vm265_vm1, %v663_v39  ;;  %v664_v51 = vadd.f32 %v1206_v47, %v305_v36  ;;  %v549_v52 = vpop.f32.mrb[7].mxu0  ;;  %v861_v60 = vmul.f32 %v726_v45, %v726_v45  ;;  %v791_v6 = vsel %vm265_vm1, %v726_v45, 0.0  ;;  %v1221_v10 = vpop.f32.mrb[4].mxu1 }
  0xfc   : > { %756 = vst.msk [vmem:[%s1601_s14] sm:$0xff] %vm265_vm1, %v724_v50  ;;  %v859_v55 = vmul.f32 %v724_v50, %v724_v50  ;;  %v727_v56 = vld [vmem:[#allocation2 + $0x18] sm:$0xff]  ;;  %693 = vst.msk [vmem:[#allocation2 + $0x20] sm:$0xff] %vm265_vm1, %v661_v46  ;;  %v662_v57 = vadd.f32 %v549_v52, %v303_v41  ;;  %v788_v61 = vsel %vm265_vm1, %v724_v50, 0.0  ;;  %v679_v17 = vadd.f32 %v1221_v10, %v320_v1  ;;  %v610_v18 = vpop.f32.mrb[5].mxu1  ;;  %v310_v52 = vld [vmem:[#allocation2 + $0x60] sm:$0xff] }
  0xfd   : > { %759 = vst.msk [vmem:[%s1601_s14 + $0x18] sm:$0xff] %vm265_vm1, %v727_v56  ;;  %v725_v59 = vld [vmem:[#allocation2 + $0x8] sm:$0xff]  ;;  %696 = vst.msk [vmem:[#allocation2 + $0x38] sm:$0xff] %vm265_vm1, %v664_v51  ;;  %v862_v2 = vmul.f32 %v727_v56, %v727_v56  ;;  %v894_v19 = vsel %vm265_vm1, %v861_v60, 0.0  ;;  %v793_v20 = vsel %vm265_vm1, %v727_v56, 0.0  ;;  %v1626_v24 = vld [vmem:[#allocation2 + $0x90] sm:$0xff]  ;;  %v677_v25 = vadd.f32 %v610_v18, %v318_v5 }
  0xfe   : > { %757 = vst.msk [vmem:[%s1601_s14 + $0x8] sm:$0xff] %vm265_vm1, %v725_v59  ;;  %v789_v62 = vsel %vm265_vm1, %v725_v59, 0.0  ;;  %v860_v63 = vmul.f32 %v725_v59, %v725_v59  ;;  %694 = vst.msk [vmem:[#allocation2 + $0x28] sm:$0xff] %vm265_vm1, %v662_v57  ;;  %v891_v7 = vsel %vm265_vm1, %v859_v55, 0.0  ;;  %v1628_v26 = vpop.f32.mrb[6].mxu1  ;;  %v1637_v32 = vld [vmem:[#allocation2 + $0x80] sm:$0xff] }
  0xff   : > { %v790_v3 = vadd.f32 %v789_v62, %v788_v61  ;;  %v896_v27 = vsel %vm265_vm1, %v862_v2, 0.0  ;;  %774 = vst.msk [vmem:[%s1601_s14 + $0x90] sm:$0xff] %vm265_vm1, %v1626_v24  ;;  %711 = vst.msk [vmem:[#allocation2 + $0xb0] sm:$0xff] %vm265_vm1, %v679_v17  ;;  %v1640_v33 = vpop.f32.mrb[7].mxu1  ;;  %v1649_v39 = vld [vmem:[#allocation2 + $0x98] sm:$0xff]  ;;  %v311_v62 = vld [vmem:[#allocation2 + $0x68] sm:$0xff] }
 0x100   : > { %v892_v8 = vsel %vm265_vm1, %v860_v63, 0.0  ;;  %v1209_v9 = vpop.f32.mrb[8].mxu0  ;;  %772 = vst.msk [vmem:[%s1601_s14 + $0x80] sm:$0xff] %vm265_vm1, %v1637_v32  ;;  %709 = vst.msk [vmem:[#allocation2 + $0xa0] sm:$0xff] %vm265_vm1, %v677_v25  ;;  %v1657_v43 = vld [vmem:[#allocation2 + $0x88] sm:$0xff]  ;;  %v313_v61 = vld [vmem:[#allocation2 + $0x78] sm:$0xff] }
 0x101   : > { %v792_v11 = vadd.f32 %v791_v6, %v790_v3  ;;  %v893_v12 = vadd.f32 %v892_v8, %v891_v7  ;;  %v667_v13 = vadd.f32 %v1209_v9, %v308_v0  ;;  %v562_v14 = vpop.f32.mrb[9].mxu0  ;;  %775 = vst.msk [vmem:[%s1601_s14 + $0x98] sm:$0xff] %vm265_vm1, %v1649_v39  ;;  %773 = vst.msk [vmem:[%s1601_s14 + $0x88] sm:$0xff] %vm265_vm1, %v1657_v43  ;;  %v321_v18 = vld [vmem:[#allocation2 + $0xb8] sm:$0xff] }
 0x102   : > { %v730_v21 = vld [vmem:[#allocation2 + $0x30] sm:$0xff]  ;;  %v665_v22 = vadd.f32 %v562_v14, %v306_v4  ;;  %v1210_v23 = vpop.f32.mrb[10].mxu0 }
 0x103   : > { %v895_v28 = vadd.f32 %v894_v19, %v893_v12  ;;  %762 = vst.msk [vmem:[%s1601_s14 + $0x30] sm:$0xff] %vm265_vm1, %v730_v21  ;;  %v728_v29 = vld [vmem:[#allocation2 + $0x20] sm:$0xff]  ;;  %v794_v30 = vadd.f32 %v793_v20, %v792_v11  ;;  %699 = vst.msk [vmem:[#allocation2 + $0x50] sm:$0xff] %vm265_vm1, %v667_v13  ;;  %v565_v31 = vpop.f32.mrb[11].mxu0  ;;  %v668_v37 = vadd.f32 %v1210_v23, %v309_v15  ;;  %v799_v53 = vsel %vm265_vm1, %v730_v21, 0.0  ;;  %v1225_v56 = vpop.f32.mrb[8].mxu1 }
 0x104   : > { %760 = vst.msk [vmem:[%s1601_s14 + $0x20] sm:$0xff] %vm265_vm1, %v728_v29  ;;  %v795_v34 = vsel %vm265_vm1, %v728_v29, 0.0  ;;  %v863_v35 = vmul.f32 %v728_v29, %v728_v29  ;;  %v731_v36 = vld [vmem:[#allocation2 + $0x38] sm:$0xff]  ;;  %697 = vst.msk [vmem:[#allocation2 + $0x40] sm:$0xff] %vm265_vm1, %v665_v22  ;;  %v666_v38 = vadd.f32 %v565_v31, %v307_v16  ;;  %v865_v44 = vmul.f32 %v730_v21, %v730_v21  ;;  %v626_v63 = vpop.f32.mrb[9].mxu1  ;;  %v319_v19 = vld [vmem:[#allocation2 + $0xa8] sm:$0xff] }
 0x105   : > { %v796_v40 = vadd.f32 %v795_v34, %v794_v30  ;;  %v897_v41 = vadd.f32 %v896_v27, %v895_v28  ;;  %763 = vst.msk [vmem:[%s1601_s14 + $0x38] sm:$0xff] %vm265_vm1, %v731_v36  ;;  %v729_v42 = vld [vmem:[#allocation2 + $0x28] sm:$0xff]  ;;  %700 = vst.msk [vmem:[#allocation2 + $0x58] sm:$0xff] %vm265_vm1, %v668_v37  ;;  %v866_v50 = vmul.f32 %v731_v36, %v731_v36  ;;  %v801_v1 = vsel %vm265_vm1, %v731_v36, 0.0  ;;  %v1226_v5 = vpop.f32.mrb[10].mxu1  ;;  %v324_v20 = vld [vmem:[#allocation2 + $0xd0] sm:$0xff] }
 0x106   : > { %v898_v45 = vsel %vm265_vm1, %v863_v35, 0.0  ;;  %761 = vst.msk [vmem:[%s1601_s14 + $0x28] sm:$0xff] %vm265_vm1, %v729_v42  ;;  %v797_v46 = vsel %vm265_vm1, %v729_v42, 0.0  ;;  %v864_v47 = vmul.f32 %v729_v42, %v729_v42  ;;  %698 = vst.msk [vmem:[#allocation2 + $0x48] sm:$0xff] %vm265_vm1, %v666_v38  ;;  %v902_v0 = vsel %vm265_vm1, %v865_v44, 0.0  ;;  %v1672_v6 = vld [vmem:[#allocation2 + $0xb0] sm:$0xff] }
 0x107   : > { %v899_v49 = vadd.f32 %v898_v45, %v897_v41  ;;  %v798_v51 = vadd.f32 %v797_v46, %v796_v40  ;;  %v904_v7 = vsel %vm265_vm1, %v866_v50, 0.0  ;;  %v1678_v12 = vld [vmem:[#allocation2 + $0xa0] sm:$0xff]  ;;  %v629_v13 = vpop.f32.mrb[11].mxu1  ;;  %778 = vst.msk [vmem:[%s1601_s14 + $0xb0] sm:$0xff] %vm265_vm1, %v1672_v6  ;;  %v325_v34 = vld [vmem:[#allocation2 + $0xd8] sm:$0xff]  ;;  %v323_v35 = vld [vmem:[#allocation2 + $0xc8] sm:$0xff]  ;;  %v680_v40 = vadd.f32 %v1628_v26, %v321_v18 }
 0x108   : > { %v900_v54 = vsel %vm265_vm1, %v864_v47, 0.0  ;;  %v1213_v55 = vpop.f32.mrb[12].mxu0  ;;  %776 = vst.msk [vmem:[%s1601_s14 + $0xa0] sm:$0xff] %vm265_vm1, %v1678_v12  ;;  %v322_v27 = vld [vmem:[#allocation2 + $0xc0] sm:$0xff]  ;;  %v328_v41 = vld [vmem:[#allocation2 + $0xf0] sm:$0xff]  ;;  %v678_v45 = vadd.f32 %v1640_v33, %v319_v19  ;;  %v683_v46 = vadd.f32 %v1225_v56, %v324_v20 }
 0x109   : > { %v800_v57 = vadd.f32 %v799_v53, %v798_v51  ;;  %v901_v58 = vadd.f32 %v900_v54, %v899_v49  ;;  %v671_v59 = vadd.f32 %v1213_v55, %v312_v48  ;;  %v578_v60 = vpop.f32.mrb[13].mxu0  ;;  %v326_v42 = vld [vmem:[#allocation2 + $0xe0] sm:$0xff]  ;;  %v681_v47 = vadd.f32 %v626_v63, %v322_v27  ;;  %v329_v49 = vld [vmem:[#allocation2 + $0xf8] sm:$0xff]  ;;  %712 = vst.msk [vmem:[#allocation2 + $0xb8] sm:$0xff] %vm265_vm1, %v680_v40  ;;  %v327_v55 = vld [vmem:[#allocation2 + $0xe8] sm:$0xff] }
 0x10a   : > { %v734_v2 = vld [vmem:[#allocation2 + $0x50] sm:$0xff]  ;;  %v669_v3 = vadd.f32 %v578_v60, %v310_v52  ;;  %v1214_v4 = vpop.f32.mrb[14].mxu0  ;;  %v684_v52 = vadd.f32 %v1226_v5, %v325_v34  ;;  %v682_v53 = vadd.f32 %v629_v13, %v323_v35  ;;  %710 = vst.msk [vmem:[#allocation2 + $0xa8] sm:$0xff] %vm265_vm1, %v678_v45  ;;  %715 = vst.msk [vmem:[#allocation2 + $0xd0] sm:$0xff] %vm265_vm1, %v683_v46 }
 0x10b   : > { %v903_v8 = vadd.f32 %v902_v0, %v901_v58  ;;  %766 = vst.msk [vmem:[%s1601_s14 + $0x50] sm:$0xff] %vm265_vm1, %v734_v2  ;;  %v732_v9 = vld [vmem:[#allocation2 + $0x40] sm:$0xff]  ;;  %v802_v10 = vadd.f32 %v801_v1, %v800_v57  ;;  %703 = vst.msk [vmem:[#allocation2 + $0x70] sm:$0xff] %vm265_vm1, %v671_v59  ;;  %v581_v11 = vpop.f32.mrb[15].mxu0  ;;  %v672_v16 = vadd.f32 %v1214_v4, %v313_v61  ;;  %v807_v28 = vsel %vm265_vm1, %v734_v2, 0.0  ;;  %v1229_v48 = vpop.f32.mrb[12].mxu1 }
 0x10c   : > { %764 = vst.msk [vmem:[%s1601_s14 + $0x40] sm:$0xff] %vm265_vm1, %v732_v9  ;;  %v803_v14 = vsel %vm265_vm1, %v732_v9, 0.0  ;;  %v867_v15 = vmul.f32 %v732_v9, %v732_v9  ;;  %701 = vst.msk [vmem:[#allocation2 + $0x60] sm:$0xff] %vm265_vm1, %v669_v3  ;;  %v670_v17 = vadd.f32 %v581_v11, %v311_v62  ;;  %v735_v23 = vld [vmem:[#allocation2 + $0x58] sm:$0xff]  ;;  %v869_v29 = vmul.f32 %v734_v2, %v734_v2  ;;  %v642_v54 = vpop.f32.mrb[13].mxu1 }
 0x10d   : > { %v804_v21 = vadd.f32 %v803_v14, %v802_v10  ;;  %v905_v22 = vadd.f32 %v904_v7, %v903_v8  ;;  %v733_v25 = vld [vmem:[#allocation2 + $0x48] sm:$0xff]  ;;  %767 = vst.msk [vmem:[%s1601_s14 + $0x58] sm:$0xff] %vm265_vm1, %v735_v23  ;;  %704 = vst.msk [vmem:[#allocation2 + $0x78] sm:$0xff] %vm265_vm1, %v672_v16  ;;  %v870_v44 = vmul.f32 %v735_v23, %v735_v23  ;;  %v809_v26 = vsel %vm265_vm1, %v735_v23, 0.0  ;;  %v1230_v59 = vpop.f32.mrb[14].mxu1 }
 0x10e   : > { %v906_v30 = vsel %vm265_vm1, %v867_v15, 0.0  ;;  %765 = vst.msk [vmem:[%s1601_s14 + $0x48] sm:$0xff] %vm265_vm1, %v733_v25  ;;  %v805_v31 = vsel %vm265_vm1, %v733_v25, 0.0  ;;  %702 = vst.msk [vmem:[#allocation2 + $0x68] sm:$0xff] %vm265_vm1, %v670_v17  ;;  %v868_v38 = vmul.f32 %v733_v25, %v733_v25  ;;  %v687_v33 = vadd.f32 %v1229_v48, %v328_v41  ;;  %v645_v0 = vpop.f32.mrb[15].mxu1 }
 0x10f   : > { %v907_v36 = vadd.f32 %v906_v30, %v905_v22  ;;  %v806_v37 = vadd.f32 %v805_v31, %v804_v21  ;;  %713 = vst.msk [vmem:[#allocation2 + $0xc0] sm:$0xff] %vm265_vm1, %v681_v47  ;;  %v685_v56 = vadd.f32 %v642_v54, %v326_v42  ;;  %v910_v60 = vsel %vm265_vm1, %v869_v29, 0.0  ;;  %716 = vst.msk [vmem:[#allocation2 + $0xd8] sm:$0xff] %vm265_vm1, %v684_v52 }
 0x110   : > { %v908_v51 = vsel %vm265_vm1, %v868_v38, 0.0  ;;  %714 = vst.msk [vmem:[#allocation2 + $0xc8] sm:$0xff] %vm265_vm1, %v682_v53  ;;  %v688_v63 = vadd.f32 %v1230_v59, %v329_v49  ;;  %719 = vst.msk [vmem:[#allocation2 + $0xf0] sm:$0xff] %vm265_vm1, %v687_v33  ;;  %v686_v4 = vadd.f32 %v645_v0, %v327_v55  ;;  %v912_v5 = vsel %vm265_vm1, %v870_v44, 0.0  ;;  %v1726_v18 = vld [vmem:[#allocation2 + $0xb8] sm:$0xff] }
 0x111   : > { %v808_v50 = vadd.f32 %v807_v28, %v806_v37  ;;  %v909_v57 = vadd.f32 %v908_v51, %v907_v36  ;;  %717 = vst.msk [vmem:[#allocation2 + $0xe0] sm:$0xff] %vm265_vm1, %v685_v56  ;;  %v875_v22 = vmul.f32 %v1637_v32, %v1637_v32  ;;  %v745_v23 = vld [vmem:[#allocation2 + $0xa8] sm:$0xff]  ;;  %v1732_v27 = vld [vmem:[#allocation2 + $0xd0] sm:$0xff]  ;;  %779 = vst.msk [vmem:[%s1601_s14 + $0xb8] sm:$0xff] %vm265_vm1, %v1726_v18  ;;  %v819_v36 = vsel %vm265_vm1, %v1637_v32, 0.0 }
 0x112   : > { %v738_v58 = vld [vmem:[#allocation2 + $0x70] sm:$0xff]  ;;  %720 = vst.msk [vmem:[#allocation2 + $0xf8] sm:$0xff] %vm265_vm1, %v688_v63  ;;  %718 = vst.msk [vmem:[#allocation2 + $0xe8] sm:$0xff] %vm265_vm1, %v686_v4  ;;  %v876_v45 = vmul.f32 %v1657_v43, %v1657_v43  ;;  %v877_v49 = vmul.f32 %v1626_v24, %v1626_v24  ;;  %v823_v53 = vsel %vm265_vm1, %v1626_v24, 0.0  ;;  %v878_v54 = vmul.f32 %v1649_v39, %v1649_v39 }
 0x113   : > { %770 = vst.msk [vmem:[%s1601_s14 + $0x70] sm:$0xff] %vm265_vm1, %v738_v58  ;;  %v736_v61 = vld [vmem:[#allocation2 + $0x60] sm:$0xff]  ;;  %v810_v62 = vadd.f32 %v809_v26, %v808_v50  ;;  %v911_v1 = vadd.f32 %v910_v60, %v909_v57  ;;  %v873_v13 = vmul.f32 %v738_v58, %v738_v58  ;;  %v815_v19 = vsel %vm265_vm1, %v738_v58, 0.0  ;;  %777 = vst.msk [vmem:[%s1601_s14 + $0xa8] sm:$0xff] %vm265_vm1, %v745_v23 }
 0x114   : > { %768 = vst.msk [vmem:[%s1601_s14 + $0x60] sm:$0xff] %vm265_vm1, %v736_v61  ;;  %v811_v2 = vsel %vm265_vm1, %v736_v61, 0.0  ;;  %v871_v3 = vmul.f32 %v736_v61, %v736_v61  ;;  %v739_v8 = vld [vmem:[#allocation2 + $0x78] sm:$0xff]  ;;  %782 = vst.msk [vmem:[%s1601_s14 + $0xd0] sm:$0xff] %vm265_vm1, %v1732_v27  ;;  %v922_v44 = vsel %vm265_vm1, %v875_v22, 0.0  ;;  %v821_v50 = vsel %vm265_vm1, %v1657_v43, 0.0 }
 0x115   : > { %v812_v7 = vadd.f32 %v811_v2, %v810_v62  ;;  %v737_v9 = vld [vmem:[#allocation2 + $0x68] sm:$0xff]  ;;  %v913_v10 = vadd.f32 %v912_v5, %v911_v1  ;;  %771 = vst.msk [vmem:[%s1601_s14 + $0x78] sm:$0xff] %vm265_vm1, %v739_v8  ;;  %v874_v20 = vmul.f32 %v739_v8, %v739_v8  ;;  %v918_v34 = vsel %vm265_vm1, %v873_v13, 0.0 }
 0x116   : > { %v914_v11 = vsel %vm265_vm1, %v871_v3, 0.0  ;;  %769 = vst.msk [vmem:[%s1601_s14 + $0x68] sm:$0xff] %vm265_vm1, %v737_v9  ;;  %v813_v14 = vsel %vm265_vm1, %v737_v9, 0.0  ;;  %v872_v15 = vmul.f32 %v737_v9, %v737_v9  ;;  %v748_v25 = vld [vmem:[#allocation2 + $0xc0] sm:$0xff]  ;;  %v1739_v31 = vld [vmem:[#allocation2 + $0xd8] sm:$0xff]  ;;  %v817_v35 = vsel %vm265_vm1, %v739_v8, 0.0 }
 0x117   : > { %v915_v16 = vadd.f32 %v914_v11, %v913_v10  ;;  %v814_v17 = vadd.f32 %v813_v14, %v812_v7  ;;  %v1737_v30 = vld [vmem:[#allocation2 + $0xc8] sm:$0xff]  ;;  %780 = vst.msk [vmem:[%s1601_s14 + $0xc0] sm:$0xff] %vm265_vm1, %v748_v25  ;;  %v1754_v38 = vld [vmem:[#allocation2 + $0xf0] sm:$0xff]  ;;  %783 = vst.msk [vmem:[%s1601_s14 + $0xd8] sm:$0xff] %vm265_vm1, %v1739_v31  ;;  %v920_v32 = vsel %vm265_vm1, %v874_v20, 0.0  ;;  %v924_v55 = vsel %vm265_vm1, %v876_v45, 0.0 }
 0x118   : > { %v916_v21 = vsel %vm265_vm1, %v872_v15, 0.0  ;;  %v1752_v37 = vld [vmem:[#allocation2 + $0xe0] sm:$0xff]  ;;  %781 = vst.msk [vmem:[%s1601_s14 + $0xc8] sm:$0xff] %vm265_vm1, %v1737_v30  ;;  %786 = vst.msk [vmem:[%s1601_s14 + $0xf0] sm:$0xff] %vm265_vm1, %v1754_v38  ;;  %v879_v26 = vmul.f32 %v1678_v12, %v1678_v12  ;;  %v825_v33 = vsel %vm265_vm1, %v1649_v39, 0.0  ;;  %v827_v43 = vsel %vm265_vm1, %v1678_v12, 0.0 }
 0x119   : > { %v816_v28 = vadd.f32 %v815_v19, %v814_v17  ;;  %v917_v29 = vadd.f32 %v916_v21, %v915_v16  ;;  %v1762_v42 = vld [vmem:[#allocation2 + $0xf8] sm:$0xff]  ;;  %784 = vst.msk [vmem:[%s1601_s14 + $0xe0] sm:$0xff] %vm265_vm1, %v1752_v37  ;;  %v1774_v46 = vld [vmem:[#allocation2 + $0xe8] sm:$0xff]  ;;  %v926_v56 = vsel %vm265_vm1, %v877_v49, 0.0  ;;  %v880_v60 = vmul.f32 %v745_v23, %v745_v23 }
 0x11a   : > { %787 = vst.msk [vmem:[%s1601_s14 + $0xf8] sm:$0xff] %vm265_vm1, %v1762_v42  ;;  %785 = vst.msk [vmem:[%s1601_s14 + $0xe8] sm:$0xff] %vm265_vm1, %v1774_v46  ;;  %v928_v61 = vsel %vm265_vm1, %v878_v54, 0.0  ;;  %v930_v62 = vsel %vm265_vm1, %v879_v26, 0.0  ;;  %v829_v1 = vsel %vm265_vm1, %v745_v23, 0.0  ;;  %v881_v2 = vmul.f32 %v1672_v6, %v1672_v6  ;;  %s1318_s14 = scalar_lea.vmem %s1317_s13, 32 }
 0x11b   : > { %v919_v40 = vadd.f32 %v918_v34, %v917_v29  ;;  %v818_v41 = vadd.f32 %v817_v35, %v816_v28  ;;  %v831_v12 = vsel %vm265_vm1, %v1672_v6, 0.0  ;;  %v882_v4 = vmul.f32 %v1726_v18, %v1726_v18  ;;  %p1320_p2 = scmp.lt.s32.totalorder %s1318_s14, %s1312_s11 }
 0x11c   : > { %v883_v5 = vmul.f32 %v748_v25, %v748_v25  ;;  %v932_v7 = vsel %vm265_vm1, %v880_v60, 0.0  ;;  %v833_v10 = vsel %vm265_vm1, %v1726_v18, 0.0  ;;  %v835_v11 = vsel %vm265_vm1, %v748_v25, 0.0 }
 0x11d   : > { %v820_v47 = vadd.f32 %v819_v36, %v818_v41  ;;  %v921_v48 = vadd.f32 %v920_v32, %v919_v40  ;;  %v934_v13 = vsel %vm265_vm1, %v881_v2, 0.0  ;;  %v884_v6 = vmul.f32 %v1737_v30, %v1737_v30  ;;  %p1321_p3 = por %p1320_p2, %p1319_p1 }
 0x11e   : > { %v936_v16 = vsel %vm265_vm1, %v882_v4, 0.0  ;;  %v938_v17 = vsel %vm265_vm1, %v883_v5, 0.0  ;;  %v837_v21 = vsel %vm265_vm1, %v1737_v30, 0.0  ;;  %v885_v18 = vmul.f32 %v1732_v27, %v1732_v27 }
 0x11f   : > { %v923_v51 = vadd.f32 %v922_v44, %v921_v48  ;;  %v822_v52 = vadd.f32 %v821_v50, %v820_v47  ;;  %v839_v25 = vsel %vm265_vm1, %v1732_v27, 0.0  ;;  %v886_v28 = vmul.f32 %v1739_v31, %v1739_v31  ;;  %p1322_p5 = pnand %p1321_p3, %p1315_p0 }
 0x120   : > { %v887_v29 = vmul.f32 %v1752_v37, %v1752_v37  ;;  %v940_v34 = vsel %vm265_vm1, %v884_v6, 0.0  ;;  %v841_v30 = vsel %vm265_vm1, %v1739_v31, 0.0  ;;  %v843_v40 = vsel %vm265_vm1, %v1752_v37, 0.0 }
 0x121   : > { %v824_v57 = vadd.f32 %v823_v53, %v822_v52  ;;  %v925_v58 = vadd.f32 %v924_v55, %v923_v51  ;;  %v942_v41 = vsel %vm265_vm1, %v885_v18, 0.0  ;;  %v888_v44 = vmul.f32 %v1774_v46, %v1774_v46 }
 0x122   : > { %v944_v45 = vsel %vm265_vm1, %v886_v28, 0.0  ;;  %v946_v47 = vsel %vm265_vm1, %v887_v29, 0.0  ;;  %v845_v50 = vsel %vm265_vm1, %v1774_v46, 0.0  ;;  %v889_v31 = vmul.f32 %v1754_v38, %v1754_v38 }
 0x123   : > { %v826_v59 = vadd.f32 %v825_v33, %v824_v57  ;;  %v927_v24 = vadd.f32 %v926_v56, %v925_v58  ;;  %v847_v52 = vsel %vm265_vm1, %v1754_v38, 0.0  ;;  %v890_v53 = vmul.f32 %v1762_v42, %v1762_v42 }
 0x124   : > { %v948_v54 = vsel %vm265_vm1, %v888_v44, 0.0  ;;  %v849_v46 = vsel %vm265_vm1, %v1762_v42, 0.0  ;;  %v950_v57 = vsel %vm265_vm1, %v889_v31, 0.0 }
 0x125   : > { %v828_v63 = vadd.f32 %v827_v43, %v826_v59  ;;  %v929_v0 = vadd.f32 %v928_v61, %v927_v24  ;;  %v952_v43 = vsel %vm265_vm1, %v890_v53, 0.0 }
 0x127   : > { %v830_v39 = vadd.f32 %v829_v1, %v828_v63  ;;  %v931_v3 = vadd.f32 %v930_v62, %v929_v0 }
 0x129   : > { %v832_v8 = vadd.f32 %v831_v12, %v830_v39  ;;  %v933_v9 = vadd.f32 %v932_v7, %v931_v3 }
 0x12b   : > { %v834_v14 = vadd.f32 %v833_v10, %v832_v8  ;;  %v935_v15 = vadd.f32 %v934_v13, %v933_v9 }
 0x12d   : > { %v836_v19 = vadd.f32 %v835_v11, %v834_v14  ;;  %v937_v20 = vadd.f32 %v936_v16, %v935_v15 }
 0x12f   : > { %v838_v22 = vadd.f32 %v837_v21, %v836_v19  ;;  %v939_v23 = vadd.f32 %v938_v17, %v937_v20 }
 0x131   : > { %v840_v35 = vadd.f32 %v839_v25, %v838_v22  ;;  %v941_v36 = vadd.f32 %v940_v34, %v939_v23 }
 0x133   : > { %v842_v32 = vadd.f32 %v841_v30, %v840_v35  ;;  %v943_v27 = vadd.f32 %v942_v41, %v941_v36 }
 0x135   : > { %v844_v48 = vadd.f32 %v843_v40, %v842_v32  ;;  %v945_v49 = vadd.f32 %v944_v45, %v943_v27 }
 0x137   : > { %v846_v37 = vadd.f32 %v845_v50, %v844_v48  ;;  %v947_v51 = vadd.f32 %v946_v47, %v945_v49 }
 0x139   : > { %v848_v55 = vadd.f32 %v847_v52, %v846_v37  ;;  %v949_v26 = vadd.f32 %v948_v54, %v947_v51 }
 0x13b   : > { %v850_v58 = vadd.f32 %v849_v46, %v848_v55  ;;  %v951_v33 = vadd.f32 %v950_v57, %v949_v26 }
 0x13d   : > { %v851_v56 = vrot.slane %v850_v58, 4  ;;  %v953_v59 = vadd.f32 %v952_v43, %v951_v33 }
 0x13f   : > { %v852_v38 = vadd.f32 %v851_v56, %v850_v58  ;;  %v954_v24 = vrot.slane %v953_v59, 4 }
 0x141   : > { %v853_v60 = vrot.slane %v852_v38, 2  ;;  %v955_v61 = vadd.f32 %v954_v24, %v953_v59 }
 0x143   : > { %v854_v62 = vadd.f32 %v853_v60, %v852_v38  ;;  %v956_v63 = vrot.slane %v955_v61, 2 }
 0x145   : > { %v855_v42 = vrot.slane %v854_v62, 1  ;;  %v957_v0 = vadd.f32 %v956_v63, %v955_v61 }
 0x147   : > { %v856_v1 = vadd.f32 %v855_v42, %v854_v62  ;;  %v958_v2 = vrot.slane %v957_v0, 1 }
 0x149   : > { %858 = vst.msk [vmem:[%s234_s24] sm:$0x1] %vm857_vm2, %v856_v1  ;;  %v959_v39 = vadd.f32 %v958_v2, %v957_v0 }
 0x14a   : > { %1325 = shalt.err (!%p1322_p5)
}
 0x14b   : > { %s1326_s22 = scalar_lea.hbm %s1860_s7, 16  ;;  %s1330_s6 = scalar_lea.hbm %s1944_s3, 32 }
 0x14c   : > { %p1327_p6 = scmp.ne.s32.totalorder %s1860_s7, %s1326_s22  ;;  %p1331_p10 = scmp.lt.u32.totalorder %s1860_s7, %s1944_s3 }
 0x14d   : > { %p1332_p11 = scmp.lt.u32.totalorder %s1330_s6, %s1326_s22  ;;  %p1334_p13 = scmp.lt.u32.totalorder %s1326_s22, %s1860_s7 }
 0x14e   : > { %p1328_p7 = pnand %p1327_p6, %p1492_p4 }
 0x14f   : > { %p1333_p12 = por %p1332_p11, %p1331_p10 }
 0x150   : > { %p1329_p9 = pneg %p1328_p7 }
 0x151   : > { %p1335_p0 = por %p1334_p13, %p1333_p12 }
 0x153   : > { %p1336_p1 = pnand %p1335_p0, %p1329_p9 }
 0x155   : > { %1339 = shalt.err (!%p1336_p1)
}
 0x156   : > { %1235 = dma.vmem_to_hbm [thread:$0]  (%p1492_p4), %s1862_s26, 16, %s1860_s7, %s967_s10   ;;  %960 = vst.msk [vmem:[%s240_s29] sm:$0x1] %vm857_vm2, %v959_v39 }
 0x157   : > { %s971_s11 = scalar_lea.sflag [#allocation6], %s1850_s21  ;;  %s1340_s12 = scalar_lea.vmem %s1870_s30, 16 }
 0x158   : > { %p1341_p2 = scmp.ne.s32.totalorder %s1870_s30, %s1340_s12  ;;  %s1426_s13 = smov [#allocation5]  }
 0x159   : > { %s1344_s14 = sshll.u32 %s1426_s13, 4  ;;  %s1345_s14 = int_to_ptr.vmem [resolvable:$false] %s1344_s14 }
 0x15a   : > { %p1342_p3 = pnand %p1341_p2, %p1492_p4  ;;  %s1346_s22 = scalar_lea.vmem %s1345_s14, 32 }
 0x15b   : > { %p1347_p6 = scmp.lt.s32.totalorder %s1870_s30, %s1345_s14  ;;  %p1348_p7 = scmp.lt.s32.totalorder %s1346_s22, %s1340_s12 }
 0x15c   : > { %p1343_p5 = pneg %p1342_p3 }
 0x15d   : > { %p1349_p9 = por %p1348_p7, %p1347_p6 }
 0x15f   : > { %p1350_p10 = pnand %p1349_p9, %p1343_p5 }
 0x161   : > { %1353 = shalt.err (!%p1350_p10)
}
 0x162   : > { %s1354_s21 = scalar_lea.hbm %s1868_s9, 16  ;;  %s1358_s7 = scalar_lea.hbm %s1945_s4, 32 }
 0x163   : > { %p1355_p11 = scmp.ne.s32.totalorder %s1868_s9, %s1354_s21  ;;  %p1359_p0 = scmp.lt.u32.totalorder %s1868_s9, %s1945_s4 }
 0x164   : > { %p1360_p1 = scmp.lt.u32.totalorder %s1358_s7, %s1354_s21  ;;  %p1362_p3 = scmp.lt.u32.totalorder %s1354_s21, %s1868_s9 }
 0x165   : > { %p1356_p12 = pnand %p1355_p11, %p1492_p4 }
 0x166   : > { %p1361_p2 = por %p1360_p1, %p1359_p0 }
 0x167   : > { %p1357_p13 = pneg %p1356_p12 }
 0x168   : > { %p1363_p5 = por %p1362_p3, %p1361_p2 }
 0x16a   : > { %p1364_p6 = pnand %p1363_p5, %p1357_p13 }
 0x16c   : > { %1367 = shalt.err (!%p1364_p6)
}
 0x16d   : > { %1236 = dma.vmem_to_hbm [thread:$0]  (%p1492_p4), %s1870_s30, 16, %s1868_s9, %s971_s11  }
 0x16e PF: > { %p1246_p7 = scmp.ge.s32.totalorder %s1422_s20, 2  ;;  %s1020_s5 = sand.u32 1, %s1402_s15  }
 0x16f   : > { %s1021_s6 = scalar_lea.sflag [#allocation4], %s1020_s5 }
 0x170   : > { %p1240_p9 = pnand %p1246_p7, %p1499_p8 }
 0x172   : > { %1393 = dma.done.wait (!%p1240_p9), %s1021_s6, 16  }
 0x173   : > { %1395 = vsyncadd (!%p1240_p9), %s1021_s6, 4294967280  ;;  %s1029_s18 = scalar_lea.sflag [#allocation6], %s1020_s5 }
 0x174   : > { %1397 = dma.done.wait (!%p1240_p9), %s1029_s18, 16  }
 0x175   : > { %1399 = vsyncadd (!%p1240_p9), %s1029_s18, 4294967280  ;;  %s21_s20 = sadd.s32 1, %s1422_s20   ;;  %s1949_s15 = smov %s1406_s16 }
 0x176   : > { %p18_p10 = scmp.ge.s32.totalorder %s21_s20, 4   ;;  %s1950_s16 = smov %s1410_s17 }
 0x177   : > { %s1951_s17 = smov %s1505_s28  ;;  %s1952_s18 = smov %s1418_s19 }
 0x178   : > { %s1953_s19 = smov %s1955_s23  ;;  %20 = sbr.rel (!%p18_p10) target bundleno = 6 (0x6), region = 103 }
 0x17f   :  { %1033 = vsyncpa [#allocation4], 1 }
 0x180   :  { %1035 = vsyncpa [#allocation4 + $0x1], 1 }
 0x181   :  { %1036 = vsyncpa [#allocation6], 1 }
 0x182   :  { %1038 = vsyncpa [#allocation6 + $0x1], 1 }

</bundles_post_ra>
